<compile_context>
chip_gen: v5e
topology: v5e:2x2
jax: 0.10.0
libtpu: 0.0.40
codegen_flags: <defaults>
</compile_context>

<pallas_src>
import jax
import jax.numpy as jnp
from jax.experimental import pallas as pl
from jax.experimental.pallas import tpu as pltpu


def mlp_kernel(params_ref, xT_ref, yT_ref):
    """One lane-tile of the fused MLP.

    params_ref : SMEM f32[9]  = [w1_00, w1_01, w1_10, w1_11, b1_0, b1_1,
                                 w2_0,  w2_1,  b2_0]   (PyTorch (out,in) order)
    xT_ref     : VMEM f32[2, TN]   (features on sublanes, batch on lanes)
    yT_ref     : VMEM f32[1, TN]
    """
    # Scalar weights/biases from SMEM -> sregs (broadcast into VPU ops).
    w1_00 = params_ref[0]
    w1_01 = params_ref[1]
    w1_10 = params_ref[2]
    w1_11 = params_ref[3]
    b1_0 = params_ref[4]
    b1_1 = params_ref[5]
    w2_0 = params_ref[6]
    w2_1 = params_ref[7]
    b2_0 = params_ref[8]

    x0 = xT_ref[0:1, :]  # (1, TN) f32, lane-dense
    x1 = xT_ref[1:2, :]  # (1, TN)

    # Linear(2,2) + ReLU as pure VPU FMAs (h_j = sum_i x_i * w1[j, i] + b1[j]).
    h0 = jnp.maximum(x0 * w1_00 + x1 * w1_01 + b1_0, 0.0)
    h1 = jnp.maximum(x0 * w1_10 + x1 * w1_11 + b1_1, 0.0)

    # Linear(2,1): lane-dense (1, TN) store.
    yT_ref[...] = h0 * w2_0 + h1 * w2_1 + b2_0


def _round_up(n, m):
    return ((n + m - 1) // m) * m


def pack_params(w1, b1, w2, b2):
    """Flatten PyTorch-layout params ((out,in) weights) into a f32[9] vector.

    In real use, do this once at parameter-setup time, not per forward call.
    """
    return jnp.concatenate(
        [w1.reshape(-1), b1.reshape(-1), w2.reshape(-1), b2.reshape(-1)]
    ).astype(jnp.float32)


def my_neural_net_forward(x, w1, b1, w2, b2, *, lane_tile=512):
    """x: (B, 2) f32. w1: (2, 2) (out,in). b1: (2,). w2: (1, 2). b2: (1,).

    Returns (B, 1), identical semantics to the PyTorch module.
    """
    B = x.shape[0]
    # Lane tile: multiple of 128, capped at `lane_tile`, shrunk for small B.
    tn = min(lane_tile, _round_up(B, 128))
    b_pad = _round_up(B, tn)
    grid = (b_pad // tn,)

    params = pack_params(w1, b1, w2, b2)                    # f32[9] -> SMEM

    # Transpose so batch is the (fast) lane axis, pad batch to the tile grid.
    xT = jnp.transpose(x.astype(jnp.float32))               # (2, B)
    if b_pad != B:
        xT = jnp.pad(xT, ((0, 0), (0, b_pad - B)))          # (2, B_pad)

    yT = pl.pallas_call(
        mlp_kernel,
        out_shape=jax.ShapeDtypeStruct((1, b_pad), jnp.float32),
        grid=grid,
        in_specs=[
            # 9 scalars resident in SMEM for the whole grid.
            pl.BlockSpec(memory_space=pltpu.MemorySpace.SMEM),
            # Lane-dense batch tiles, double-buffered by the Pallas pipeline.
            pl.BlockSpec((2, tn), lambda i: (0, i)),
        ],
        out_specs=pl.BlockSpec((1, tn), lambda i: (0, i)),
        compiler_params=pltpu.CompilerParams(
            dimension_semantics=("parallel",)
        ),
    )(params, xT)

    # Back to PyTorch layout (B, 1), dropping batch padding.
    return yT[0, :B].reshape(B, 1).astype(x.dtype)


def reference_forward(x, w1, b1, w2, b2):
    h = jnp.maximum(x @ w1.T + b1, 0.0)
    return h @ w2.T + b2


if __name__ == "__main__":
    key = jax.random.PRNGKey(0)
    kx, k1, k2, k3, k4 = jax.random.split(key, 5)

    B = 8  # small batch consistent with the module (in_features = 2)
    x = jax.random.normal(kx, (B, 2), dtype=jnp.float32)

    # Deterministic params in PyTorch nn.Linear shapes: weight (out, in).
    bound1 = 1.0 / jnp.sqrt(2.0)
    w1 = jax.random.uniform(k1, (2, 2), minval=-bound1, maxval=bound1, dtype=jnp.float32)
    b1 = jax.random.uniform(k2, (2,), minval=-bound1, maxval=bound1, dtype=jnp.float32)
    w2 = jax.random.uniform(k3, (1, 2), minval=-bound1, maxval=bound1, dtype=jnp.float32)
    b2 = jax.random.uniform(k4, (1,), minval=-bound1, maxval=bound1, dtype=jnp.float32)

    out = my_neural_net_forward(x, w1, b1, w2, b2)
    out = jax.block_until_ready(out)

    ref = reference_forward(x, w1, b1, w2, b2)
    assert out.shape == (B, 1), out.shape
    assert jnp.allclose(out, ref, atol=1e-5, rtol=1e-5), (out, ref)

    print("KERNEL_OK")
</pallas_src>

<mosaic_0001>
module attributes {stable_mosaic.version = 11 : i64} {
  func.func @mlp_kernel(%arg0: i32, %arg1: memref<9xf32, #tpu.memory_space<smem>>, %arg2: memref<2x128xf32, #tpu.memory_space<vmem>>, %arg3: memref<1x128xf32, #tpu.memory_space<vmem>>) attributes {dimension_semantics = [#tpu.dimension_semantics<parallel>], iteration_bounds = array<i64: 1>, scalar_prefetch = 0 : i64, scratch_operands = 0 : i64, tpu.core_type = #tpu.core_type<tc>, window_params = [{transform_indices = @transform_0, window_bounds = array<i64: 9>}, {transform_indices = @transform_1, window_bounds = array<i64: 2, 128>}, {transform_indices = @transform_2, window_bounds = array<i64: 1, 128>}]} {
    %c0 = arith.constant 0 : index
    %0 = memref.load %arg1[%c0] : memref<9xf32, #tpu.memory_space<smem>>
    %c1 = arith.constant 1 : index
    %1 = memref.load %arg1[%c1] : memref<9xf32, #tpu.memory_space<smem>>
    %c2 = arith.constant 2 : index
    %2 = memref.load %arg1[%c2] : memref<9xf32, #tpu.memory_space<smem>>
    %c3 = arith.constant 3 : index
    %3 = memref.load %arg1[%c3] : memref<9xf32, #tpu.memory_space<smem>>
    %c4 = arith.constant 4 : index
    %4 = memref.load %arg1[%c4] : memref<9xf32, #tpu.memory_space<smem>>
    %c5 = arith.constant 5 : index
    %5 = memref.load %arg1[%c5] : memref<9xf32, #tpu.memory_space<smem>>
    %c6 = arith.constant 6 : index
    %6 = memref.load %arg1[%c6] : memref<9xf32, #tpu.memory_space<smem>>
    %c7 = arith.constant 7 : index
    %7 = memref.load %arg1[%c7] : memref<9xf32, #tpu.memory_space<smem>>
    %c8 = arith.constant 8 : index
    %8 = memref.load %arg1[%c8] : memref<9xf32, #tpu.memory_space<smem>>
    %c0_0 = arith.constant 0 : index
    %c0_1 = arith.constant 0 : index
    %9 = vector.load %arg2[%c0_0, %c0_1] : memref<2x128xf32, #tpu.memory_space<vmem>>, vector<1x128xf32>
    %c1_2 = arith.constant 1 : index
    %c0_3 = arith.constant 0 : index
    %10 = vector.load %arg2[%c1_2, %c0_3] : memref<2x128xf32, #tpu.memory_space<vmem>>, vector<1x128xf32>
    %11 = vector.broadcast %0 : f32 to vector<1x128xf32>
    %12 = arith.mulf %9, %11 : vector<1x128xf32>
    %13 = vector.broadcast %1 : f32 to vector<1x128xf32>
    %14 = arith.mulf %10, %13 : vector<1x128xf32>
    %15 = arith.addf %12, %14 : vector<1x128xf32>
    %16 = vector.broadcast %4 : f32 to vector<1x128xf32>
    %17 = arith.addf %15, %16 : vector<1x128xf32>
    %cst = arith.constant 0.000000e+00 : f32
    %18 = vector.broadcast %cst : f32 to vector<1x128xf32>
    %19 = arith.maximumf %17, %18 : vector<1x128xf32>
    %20 = vector.broadcast %2 : f32 to vector<1x128xf32>
    %21 = arith.mulf %9, %20 : vector<1x128xf32>
    %22 = vector.broadcast %3 : f32 to vector<1x128xf32>
    %23 = arith.mulf %10, %22 : vector<1x128xf32>
    %24 = arith.addf %21, %23 : vector<1x128xf32>
    %25 = vector.broadcast %5 : f32 to vector<1x128xf32>
    %26 = arith.addf %24, %25 : vector<1x128xf32>
    %cst_4 = arith.constant 0.000000e+00 : f32
    %27 = vector.broadcast %cst_4 : f32 to vector<1x128xf32>
    %28 = arith.maximumf %26, %27 : vector<1x128xf32>
    %29 = vector.broadcast %6 : f32 to vector<1x128xf32>
    %30 = arith.mulf %19, %29 : vector<1x128xf32>
    %31 = vector.broadcast %7 : f32 to vector<1x128xf32>
    %32 = arith.mulf %28, %31 : vector<1x128xf32>
    %33 = arith.addf %30, %32 : vector<1x128xf32>
    %34 = vector.broadcast %8 : f32 to vector<1x128xf32>
    %35 = arith.addf %33, %34 : vector<1x128xf32>
    %c0_5 = arith.constant 0 : index
    %c0_6 = arith.constant 0 : index
    %36 = vector.load %arg3[%c0_5, %c0_6] : memref<1x128xf32, #tpu.memory_space<vmem>>, vector<1x128xf32>
    tpu.vector_store %arg3[%c0_5, %c0_6], %35 {strides = array<i32>} : memref<1x128xf32, #tpu.memory_space<vmem>>, vector<1x128xf32>,
    return
  }
  func.func @transform_0(%arg0: i32) -> i32 {
    %c0_i32 = arith.constant 0 : i32
    %c0_i32_0 = arith.constant 0 : i32
    return %c0_i32 : i32
  }
  func.func @transform_1(%arg0: i32) -> (i32, i32) {
    %c0_i32 = arith.constant 0 : i32
    %c0_i32_0 = arith.constant 0 : i32
    return %c0_i32, %arg0 : i32, i32
  }
  func.func @transform_2(%arg0: i32) -> (i32, i32) {
    %c0_i32 = arith.constant 0 : i32
    %c0_i32_0 = arith.constant 0 : i32
    return %c0_i32, %arg0 : i32, i32
  }
}

</mosaic_0001>

<bundles_post_ra>
// kernel: tpu_custom_call.1
= control target key start
LH: loop header
LB: loop body
LE: loop exit
PB: predicated region body
PF: predicated region fallthrough
CT: control target
= control target key end

     0   :  { %7 = vsyncpa [#allocation5], 0  ;;  %s196_s0 = inlined_call_operand.hbm [shape: f32[9], index: 0, kind: input, shape index: {}]   ;;  %s197_s1 = inlined_call_operand.hbm [shape: f32[2,128], index: 1, kind: input, shape index: {}]   ;;  %s198_s2 = inlined_call_operand.hbm [shape: f32[1,128], index: 2, kind: output, shape index: {}]  }
   0x1   :  { %8 = vsyncpa [#allocation3], 0 }
   0x2   :  { %9 = vsyncpa [#allocation4], 0  ;;  %s15_s11 = sshll.u32 %s196_s0, 4  ;;  %s24_s14 = sshll.u32 %s197_s1, 4  ;;  %s16_s11 = int_to_ptr.hbm [resolvable:$true] %s15_s11  ;;  %s25_s14 = int_to_ptr.hbm [resolvable:$true] %s24_s14 }
   0x3   :  { %s169_s15 = smov [#allocation2]   ;;  %s170_s16 = smov [#allocation6]  }
   0x4   :  { %18 = dma.hbm_to_smem %s16_s11, 16, %s169_s15, [#allocation5]  }
   0x5   :  { %s26_s17 = sshll.u32 %s170_s16, 4  ;;  %s27_s17 = int_to_ptr.vmem [resolvable:$true] %s26_s17 }
   0x6   :  { %29 = dma.hbm_to_vmem [thread:$0]  %s25_s14, 32, %s27_s17, [#allocation3]  }
   0x7   :  { %163 = dma.done.wait [#allocation5], 16  }
   0x8   :  { %164 = vsyncadd [#allocation5], 4294967280 }
   0x9   :  { %165 = dma.done.wait [#allocation3], 32  }
   0xa   :  { %166 = vsyncadd [#allocation3], 4294967264 }
   0xb   :  { %38 = sfence }
   0xc   :  { %s39_s18 = sld [smem:[#allocation2]]  ;;  %v48_v0 = vld [vmem:[#allocation6] sm:$0x1]  ;;  %v49_v1 = vld [vmem:[#allocation6 + $0x1] sm:$0x1]  ;;  %s171_s25 = smov [#allocation7]  }
   0xd   :  { %s92_s19 = sld [smem:[#allocation2 + $0x1]]  ;;  %s79_s26 = sshll.u32 %s171_s25, 4  ;;  %s80_s26 = int_to_ptr.vmem [resolvable:$true] %s79_s26 }
   0xe   :  { %s93_s0 = sld [smem:[#allocation2 + $0x2]]  ;;  %s81_s29 = sshll.u32 %s198_s2, 4  ;;  %s82_s29 = int_to_ptr.hbm [resolvable:$true] %s81_s29 }
   0xf   :  { %s94_s20 = sld [smem:[#allocation2 + $0x3]] }
  0x10   :  { %s95_s21 = sld [smem:[#allocation2 + $0x4]] }
  0x11   :  { %s96_s22 = sld [smem:[#allocation2 + $0x5]] }
  0x12   :  { %s97_s1 = sld [smem:[#allocation2 + $0x6]]  ;;  %v50_v2 = vstv %s39_s18 }
  0x13   :  { %s98_s23 = sld [smem:[#allocation2 + $0x7]]  ;;  %v51_v3 = vmul.f32 %v50_v2, %v48_v0  ;;  %v52_v4 = vstv %s92_s19 }
  0x14   :  { %v53_v5 = vmul.f32 %v52_v4, %v49_v1  ;;  %v58_v6 = vstv %s93_s0  ;;  %s99_s24 = sld [smem:[#allocation2 + $0x8]] }
  0x15   :  { %v59_v7 = vmul.f32 %v58_v6, %v48_v0  ;;  %v60_v8 = vstv %s94_s20 }
  0x16   :  { %v54_v9 = vadd.f32 %v53_v5, %v51_v3  ;;  %v55_v10 = vstv %s95_s21  ;;  %v61_v11 = vmul.f32 %v60_v8, %v49_v1 }
  0x17   :  { %v63_v12 = vstv %s96_s22 }
  0x18   :  { %v56_v13 = vadd.f32 %v55_v10, %v54_v9  ;;  %v62_v14 = vadd.f32 %v61_v11, %v59_v7  ;;  %v66_v15 = vstv %s97_s1 }
  0x19   :  { %v68_v18 = vstv %s98_s23 }
  0x1a   :  { %v57_v16 = vmax.f32 %v56_v13, 0.0  ;;  %v64_v17 = vadd.f32 %v63_v12, %v62_v14  ;;  %v71_v22 = vstv %s99_s24 }
  0x1c   :  { %v65_v19 = vmax.f32 %v64_v17, 0.0  ;;  %v67_v20 = vmul.f32 %v66_v15, %v57_v16 }
  0x1e   :  { %v69_v21 = vmul.f32 %v68_v18, %v65_v19 }
  0x20   :  { %v70_v23 = vadd.f32 %v69_v21, %v67_v20 }
  0x22   :  { %v72_v24 = vadd.f32 %v71_v22, %v70_v23 }
  0x24   :  { %73 = vst [vmem:[#allocation7] sm:$0x1] %v72_v24 }
  0x25   :  { %84 = dma.vmem_to_hbm [thread:$0]  %s80_s26, 16, %s82_s29, [#allocation4]  }
  0x26   :  { %167 = dma.done.wait [#allocation4], 16  }
  0x27   :  { %168 = vsyncadd [#allocation4], 4294967280 }
  0x28   :  { %89 = vsyncpa [#allocation3], 1 }
  0x29   :  { %90 = vsyncpa [#allocation4], 1 }
  0x2a   :  { %91 = vsyncpa [#allocation5], 1 }

</bundles_post_ra>
